<compile_context>
chip_gen: v7x
topology: tpu7x:2x2x1
jax: 0.10.0
libtpu: 0.0.40
codegen_flags: <defaults>
</compile_context>

<pallas_src>
import functools

import jax
import jax.numpy as jnp
from jax.experimental import pallas as pl
from jax.experimental.pallas import tpu as pltpu


def _readout_kernel(x_ref, batch_ref, w_ref, out_ref,
                    sums_ref, counts_ref, tg_ref, *, exact_mean):
    """Two-phase readout kernel.

    grid = (phase, node_tile); iteration is row-major (phase-major), and both
    axes are marked "arbitrary" because of the sequential dependence:
      phase 0: accumulate per-graph feature sums / node counts; at the last
               tile compute tg = tanh(mean_pool @ W) into VMEM scratch.
      phase 1: St = tg @ x_tile.T, scale the one-hot assignment rows by
               sigmoid(St) and accumulate (scaled_onehot @ x_tile) into the
               resident output block.
    """
    phase = pl.program_id(0)
    t = pl.program_id(1)
    last_t = pl.num_programs(1) - 1

    num_graphs = out_ref.shape[0]
    tile_n = x_ref.shape[0]
    mxu_dtype = x_ref.dtype          # bf16 on the fast path, f32 when verifying

    x = x_ref[...]                   # (tile_n, H), mxu_dtype
    b = batch_ref[...]               # (1, tile_n) int32; padded nodes carry a
                                     # sentinel id >= num_graphs

    # onehot[g, i] = 1 iff node i of this tile belongs to graph g (exact in bf16).
    graph_ids = jax.lax.broadcasted_iota(jnp.int32, (num_graphs, tile_n), 0)
    onehot = (graph_ids == b).astype(mxu_dtype)                  # (B, tile_n)

    @pl.when(phase == 0)
    def _mean_phase():
        @pl.when(t == 0)
        def _init():
            sums_ref[...] = jnp.zeros_like(sums_ref)
            counts_ref[...] = jnp.zeros_like(counts_ref)

        # Segment sums and counts both ride the MXU (counts = onehot @ 1_N),
        # avoiding an XLU cross-lane reduction.
        sums_ref[...] += jnp.dot(onehot, x, preferred_element_type=jnp.float32)
        ones_col = jnp.ones((tile_n, 1), mxu_dtype)
        counts_ref[...] += jnp.dot(onehot, ones_col,
                                   preferred_element_type=jnp.float32)

        @pl.when(t == last_t)
        def _finalize_mean():
            counts = jnp.maximum(counts_ref[...], 1.0)
            if exact_mean:
                mean_pool = sums_ref[...] / counts
            else:
                # EUP reciprocal keeps the divide off the VALU slots.
                mean_pool = sums_ref[...] * pl.reciprocal(counts, approx=True)
            tg_ref[...] = jnp.tanh(
                jnp.dot(mean_pool.astype(mxu_dtype), w_ref[...],
                        preferred_element_type=jnp.float32))     # (B, H) f32

    @pl.when(phase == 1)
    def _pool_phase():
        @pl.when(t == 0)
        def _init_out():
            out_ref[...] = jnp.zeros_like(out_ref)

        # St[g, i] = <tg[g, :], x[i, :]>  -> (B, tile_n): replaces the old
        # onehot.T @ tg gather, the (N, H) multiply and the lane reduction.
        st = jax.lax.dot_general(
            tg_ref[...].astype(mxu_dtype), x,
            dimension_numbers=(((1,), (1,)), ((), ())),
            preferred_element_type=jnp.float32)                  # (B, tile_n)

        # onehot[g, i] != 0  =>  g == batch[i], so masking sigmoid(St) with the
        # onehot rows yields exactly coefs[i] on the matching row (no reduce),
        # and the weighted add-pool is a single matmul against x.
        scaled = (onehot.astype(jnp.float32)
                  * jax.nn.sigmoid(st)).astype(mxu_dtype)        # (B, tile_n)
        out_ref[...] += jnp.dot(scaled, x,
                                preferred_element_type=jnp.float32)


def readout_forward(x, batch, weight, num_graphs, *,
                    tile_n=128, mxu_dtype=jnp.bfloat16, exact_mean=False):
    """Pallas readout. x: (N, H) f32, batch: (N,) int, weight: (H, H) f32."""
    n, h = x.shape
    b_graphs = int(num_graphs)

    # Pad the node axis to a lane-dense multiple of tile_n.  Padded nodes get a
    # sentinel graph id (== num_graphs) so their onehot column is all zeros and
    # they never contaminate any graph's mean / sum.
    n_pad = pl.cdiv(n, tile_n) * tile_n
    pad = n_pad - n
    x_p = jnp.pad(x, ((0, pad), (0, 0))).astype(mxu_dtype)
    batch_p = jnp.pad(batch.astype(jnp.int32), (0, pad),
                      constant_values=b_graphs).reshape(1, n_pad)
    w_p = weight.astype(mxu_dtype)
    num_tiles = n_pad // tile_n

    # Per-step VMEM: 2 (double-buffer) * tile_n * H * itemsize for the x tile
    # plus the resident weight / output / scratch -- with tile_n=128 this stays
    # tiny even for large H, well inside v7x's 64 MiB per-TC VMEM.
    kernel = functools.partial(_readout_kernel, exact_mean=exact_mean)

    grid_spec = pltpu.PrefetchScalarGridSpec(
        num_scalar_prefetch=0,
        grid=(2, num_tiles),                                   # (phase, node tile)
        in_specs=[
            pl.BlockSpec((tile_n, h), lambda p, t: (t, 0)),    # x tile
            pl.BlockSpec((1, tile_n), lambda p, t: (0, t)),    # batch ids (lane-dense)
            pl.BlockSpec((h, h), lambda p, t: (0, 0)),         # weight (resident)
        ],
        out_specs=pl.BlockSpec((b_graphs, h), lambda p, t: (0, 0)),  # resident acc
        scratch_shapes=[
            pltpu.VMEM((b_graphs, h), jnp.float32),            # per-graph sums
            pltpu.VMEM((b_graphs, 1), jnp.float32),            # per-graph counts
            pltpu.VMEM((b_graphs, h), jnp.float32),            # tanh(mean @ W)
        ],
    )

    return pl.pallas_call(
        kernel,
        out_shape=jax.ShapeDtypeStruct((b_graphs, h), jnp.float32),
        grid_spec=grid_spec,
        compiler_params=pltpu.CompilerParams(
            # Both axes carry sequential dependencies (phase order + accumulators).
            dimension_semantics=("arbitrary", "arbitrary"),
        ),
    )(x_p, batch_p, w_p)


def readout_reference(x, batch, weight, num_graphs):
    """Pure-JAX reference matching the PyTorch forward."""
    onehot = (batch[None, :] == jnp.arange(num_graphs)[:, None]).astype(jnp.float32)
    counts = jnp.maximum(onehot.sum(axis=1, keepdims=True), 1.0)
    mean_pool = (onehot @ x) / counts
    tg = jnp.tanh(mean_pool @ weight)
    coefs = jax.nn.sigmoid(jnp.sum(x * tg[batch], axis=1))
    weighted = coefs[:, None] * x
    return onehot @ weighted


if __name__ == "__main__":
    nhid = 32          # args.nhid
    num_nodes = 16     # N
    num_graphs = 2     # B

    key = jax.random.PRNGKey(0)
    kx, kw = jax.random.split(key)

    # Node features from the upstream GNN.
    x = jax.random.normal(kx, (num_nodes, nhid), dtype=jnp.float32)
    # Batch vector: first 7 nodes -> graph 0, rest -> graph 1.
    batch = jnp.array([0] * 7 + [1] * 9, dtype=jnp.int32)

    # Xavier-uniform init of the (nhid, nhid) weight, deterministic.
    bound = (6.0 / (nhid + nhid)) ** 0.5
    weight = jax.random.uniform(kw, (nhid, nhid), dtype=jnp.float32,
                                minval=-bound, maxval=bound)

    ref = readout_reference(x, batch, weight, num_graphs)

    # 1) Exact-arithmetic mode (f32 MXU operands, exact mean divide): validates
    #    the algebraic rewrite / tiling tightly against the reference.
    out_exact = readout_forward(x, batch, weight, num_graphs,
                                mxu_dtype=jnp.float32, exact_mean=True)
    out_exact = jax.block_until_ready(out_exact)
    assert out_exact.shape == (num_graphs, nhid)
    assert jnp.allclose(out_exact, ref, atol=1e-4, rtol=1e-4)

    # 2) Fast mode (default): bf16 MXU operands with f32 accumulation and an
    #    EUP approx reciprocal for the mean -> looser tolerance by design.
    out_fast = readout_forward(x, batch, weight, num_graphs)
    out_fast = jax.block_until_ready(out_fast)
    assert out_fast.shape == (num_graphs, nhid)
    assert jnp.allclose(out_fast, ref, atol=5e-2, rtol=5e-2)

    print("KERNEL_OK")
</pallas_src>

<mosaic_0001>
module attributes {stable_mosaic.version = 11 : i64} {
  func.func @_readout_kernel(%arg0: i32, %arg1: i32, %arg2: memref<128x32xf32, #tpu.memory_space<vmem>>, %arg3: memref<1x128xi32, #tpu.memory_space<vmem>>, %arg4: memref<32x32xf32, #tpu.memory_space<vmem>>, %arg5: memref<2x32xf32, #tpu.memory_space<vmem>>, %arg6: memref<2x32xf32, #tpu.memory_space<vmem>>, %arg7: memref<2x1xf32, #tpu.memory_space<vmem>>, %arg8: memref<2x32xf32, #tpu.memory_space<vmem>>) attributes {dimension_semantics = [#tpu.dimension_semantics<arbitrary>, #tpu.dimension_semantics<arbitrary>], iteration_bounds = array<i64: 2, 1>, scalar_prefetch = 0 : i64, scratch_operands = 3 : i64, tpu.core_type = #tpu.core_type<tc>, window_params = [{transform_indices = @transform_0, window_bounds = array<i64: 128, 32>}, {transform_indices = @transform_1, window_bounds = array<i64: 1, 128>}, {pipeline_mode = #tpu.pipeline_mode<synchronous>, transform_indices = @transform_2, window_bounds = array<i64: 32, 32>}, {pipeline_mode = #tpu.pipeline_mode<synchronous>, transform_indices = @transform_3, window_bounds = array<i64: 2, 32>}]} {
    %c0 = arith.constant 0 : index
    %c0_0 = arith.constant 0 : index
    %0 = vector.load %arg2[%c0, %c0_0] : memref<128x32xf32, #tpu.memory_space<vmem>>, vector<128x32xf32>
    %c0_1 = arith.constant 0 : index
    %c0_2 = arith.constant 0 : index
    %1 = vector.load %arg3[%c0_1, %c0_2] : memref<1x128xi32, #tpu.memory_space<vmem>>, vector<1x128xi32>
    %2 = tpu.iota {dimensions = array<i32: 0>} : vector<2x128xi32>
    %3 = vector.broadcast %1 : vector<1x128xi32> to vector<2x128xi32>
    %4 = arith.cmpi eq, %2, %3 : vector<2x128xi32>
    %5 = arith.extui %4 : vector<2x128xi1> to vector<2x128xi32>
    %6 = arith.sitofp %5 : vector<2x128xi32> to vector<2x128xf32>
    %c0_i32 = arith.constant 0 : i32
    %7 = arith.cmpi eq, %arg0, %c0_i32 : i32
    %8 = arith.extui %7 : i1 to i32
    %c0_i32_3 = arith.constant 0 : i32
    %9 = arith.cmpi ne, %8, %c0_i32_3 : i32
    scf.if %9 {
      %c0_i32_5 = arith.constant 0 : i32
      %13 = arith.cmpi eq, %arg1, %c0_i32_5 : i32
      %14 = arith.extui %13 : i1 to i32
      %c0_i32_6 = arith.constant 0 : i32
      %15 = arith.cmpi ne, %14, %c0_i32_6 : i32
      scf.if %15 {
        %cst_19 = arith.constant 0.000000e+00 : f32
        %28 = vector.broadcast %cst_19 : f32 to vector<2x32xf32>
        %c0_20 = arith.constant 0 : index
        %c0_21 = arith.constant 0 : index
        %29 = vector.load %arg6[%c0_20, %c0_21] : memref<2x32xf32, #tpu.memory_space<vmem>>, vector<2x32xf32>
        tpu.vector_store %arg6[%c0_20, %c0_21], %28 {strides = array<i32>} : memref<2x32xf32, #tpu.memory_space<vmem>>, vector<2x32xf32>,
        %cst_22 = arith.constant 0.000000e+00 : f32
        %30 = vector.broadcast %cst_22 : f32 to vector<2x1xf32>
        %c0_23 = arith.constant 0 : index
        %c0_24 = arith.constant 0 : index
        %31 = vector.load %arg7[%c0_23, %c0_24] : memref<2x1xf32, #tpu.memory_space<vmem>>, vector<2x1xf32>
        tpu.vector_store %arg7[%c0_23, %c0_24], %30 {strides = array<i32>} : memref<2x1xf32, #tpu.memory_space<vmem>>, vector<2x1xf32>,
      } else {
      }
      %c0_7 = arith.constant 0 : index
      %c0_8 = arith.constant 0 : index
      %16 = vector.load %arg6[%c0_7, %c0_8] : memref<2x32xf32, #tpu.memory_space<vmem>>, vector<2x32xf32>
      %cst = arith.constant dense<0.000000e+00> : vector<2x32xf32>
      %17 = tpu.matmul %6, %0, %cst {dimension_numbers = #tpu.dot_dimension_numbers<[1], [0], [0], [1], [0, 0, 1, 1], [], []>} : vector<2x128xf32>, vector<128x32xf32>, vector<2x32xf32> -> vector<2x32xf32>
      %18 = arith.addf %16, %17 : vector<2x32xf32>
      %c0_9 = arith.constant 0 : index
      %c0_10 = arith.constant 0 : index
      %19 = vector.load %arg6[%c0_9, %c0_10] : memref<2x32xf32, #tpu.memory_space<vmem>>, vector<2x32xf32>
      tpu.vector_store %arg6[%c0_9, %c0_10], %18 {strides = array<i32>} : memref<2x32xf32, #tpu.memory_space<vmem>>, vector<2x32xf32>,
      %cst_11 = arith.constant 1.000000e+00 : f32
      %20 = vector.broadcast %cst_11 : f32 to vector<128x1xf32>
      %c0_12 = arith.constant 0 : index
      %c0_13 = arith.constant 0 : index
      %21 = vector.load %arg7[%c0_12, %c0_13] : memref<2x1xf32, #tpu.memory_space<vmem>>, vector<2x1xf32>
      %cst_14 = arith.constant dense<0.000000e+00> : vector<2x1xf32>
      %22 = tpu.matmul %6, %20, %cst_14 {dimension_numbers = #tpu.dot_dimension_numbers<[1], [0], [0], [1], [0, 0, 1, 1], [], []>} : vector<2x128xf32>, vector<128x1xf32>, vector<2x1xf32> -> vector<2x1xf32>
      %23 = arith.addf %21, %22 : vector<2x1xf32>
      %c0_15 = arith.constant 0 : index
      %c0_16 = arith.constant 0 : index
      %24 = vector.load %arg7[%c0_15, %c0_16] : memref<2x1xf32, #tpu.memory_space<vmem>>, vector<2x1xf32>
      tpu.vector_store %arg7[%c0_15, %c0_16], %23 {strides = array<i32>} : memref<2x1xf32, #tpu.memory_space<vmem>>, vector<2x1xf32>,
      %c0_i32_17 = arith.constant 0 : i32
      %25 = arith.cmpi eq, %arg1, %c0_i32_17 : i32
      %26 = arith.extui %25 : i1 to i32
      %c0_i32_18 = arith.constant 0 : i32
      %27 = arith.cmpi ne, %26, %c0_i32_18 : i32
      scf.if %27 {
        %c0_19 = arith.constant 0 : index
        %c0_20 = arith.constant 0 : index
        %28 = vector.load %arg7[%c0_19, %c0_20] : memref<2x1xf32, #tpu.memory_space<vmem>>, vector<2x1xf32>
        %cst_21 = arith.constant 1.000000e+00 : f32
        %29 = vector.broadcast %cst_21 : f32 to vector<2x1xf32>
        %30 = arith.maximumf %28, %29 : vector<2x1xf32>
        %c0_22 = arith.constant 0 : index
        %c0_23 = arith.constant 0 : index
        %31 = vector.load %arg6[%c0_22, %c0_23] : memref<2x32xf32, #tpu.memory_space<vmem>>, vector<2x32xf32>
        %32 = vector.broadcast %30 : vector<2x1xf32> to vector<2x32xf32>
        %33 = arith.divf %31, %32 : vector<2x32xf32>
        %c0_24 = arith.constant 0 : index
        %c0_25 = arith.constant 0 : index
        %34 = vector.load %arg4[%c0_24, %c0_25] : memref<32x32xf32, #tpu.memory_space<vmem>>, vector<32x32xf32>
        %cst_26 = arith.constant dense<0.000000e+00> : vector<2x32xf32>
        %35 = tpu.matmul %33, %34, %cst_26 {dimension_numbers = #tpu.dot_dimension_numbers<[1], [0], [0], [1], [0, 0, 1, 1], [], []>} : vector<2x32xf32>, vector<32x32xf32>, vector<2x32xf32> -> vector<2x32xf32>
        %36 = math.tanh %35 : vector<2x32xf32>
        %c0_27 = arith.constant 0 : index
        %c0_28 = arith.constant 0 : index
        %37 = vector.load %arg8[%c0_27, %c0_28] : memref<2x32xf32, #tpu.memory_space<vmem>>, vector<2x32xf32>
        tpu.vector_store %arg8[%c0_27, %c0_28], %36 {strides = array<i32>} : memref<2x32xf32, #tpu.memory_space<vmem>>, vector<2x32xf32>,
      } else {
      }
    } else {
    }
    %c1_i32 = arith.constant 1 : i32
    %10 = arith.cmpi eq, %arg0, %c1_i32 : i32
    %11 = arith.extui %10 : i1 to i32
    %c0_i32_4 = arith.constant 0 : i32
    %12 = arith.cmpi ne, %11, %c0_i32_4 : i32
    scf.if %12 {
      %c0_i32_5 = arith.constant 0 : i32
      %13 = arith.cmpi eq, %arg1, %c0_i32_5 : i32
      %14 = arith.extui %13 : i1 to i32
      %c0_i32_6 = arith.constant 0 : i32
      %15 = arith.cmpi ne, %14, %c0_i32_6 : i32
      scf.if %15 {
        %cst_15 = arith.constant 0.000000e+00 : f32
        %28 = vector.broadcast %cst_15 : f32 to vector<2x32xf32>
        %c0_16 = arith.constant 0 : index
        %c0_17 = arith.constant 0 : index
        %29 = vector.load %arg5[%c0_16, %c0_17] : memref<2x32xf32, #tpu.memory_space<vmem>>, vector<2x32xf32>
        tpu.vector_store %arg5[%c0_16, %c0_17], %28 {strides = array<i32>} : memref<2x32xf32, #tpu.memory_space<vmem>>, vector<2x32xf32>,
      } else {
      }
      %c0_7 = arith.constant 0 : index
      %c0_8 = arith.constant 0 : index
      %16 = vector.load %arg8[%c0_7, %c0_8] : memref<2x32xf32, #tpu.memory_space<vmem>>, vector<2x32xf32>
      %cst = arith.constant dense<0.000000e+00> : vector<2x128xf32>
      %17 = tpu.matmul %16, %0, %cst {dimension_numbers = #tpu.dot_dimension_numbers<[1], [1], [0], [0], [0, 0, 1, 0], [], []>} : vector<2x32xf32>, vector<128x32xf32>, vector<2x128xf32> -> vector<2x128xf32>
      %18 = arith.negf %17 : vector<2x128xf32>
      %19 = math.exp %18 : vector<2x128xf32>
      %cst_9 = arith.constant 1.000000e+00 : f32
      %20 = vector.broadcast %cst_9 : f32 to vector<2x128xf32>
      %21 = arith.addf %20, %19 : vector<2x128xf32>
      %22 = arith.divf %20, %21 : vector<2x128xf32>
      %23 = arith.mulf %6, %22 : vector<2x128xf32>
      %c0_10 = arith.constant 0 : index
      %c0_11 = arith.constant 0 : index
      %24 = vector.load %arg5[%c0_10, %c0_11] : memref<2x32xf32, #tpu.memory_space<vmem>>, vector<2x32xf32>
      %cst_12 = arith.constant dense<0.000000e+00> : vector<2x32xf32>
      %25 = tpu.matmul %23, %0, %cst_12 {dimension_numbers = #tpu.dot_dimension_numbers<[1], [0], [0], [1], [0, 0, 1, 1], [], []>} : vector<2x128xf32>, vector<128x32xf32>, vector<2x32xf32> -> vector<2x32xf32>
      %26 = arith.addf %24, %25 : vector<2x32xf32>
      %c0_13 = arith.constant 0 : index
      %c0_14 = arith.constant 0 : index
      %27 = vector.load %arg5[%c0_13, %c0_14] : memref<2x32xf32, #tpu.memory_space<vmem>>, vector<2x32xf32>
      tpu.vector_store %arg5[%c0_13, %c0_14], %26 {strides = array<i32>} : memref<2x32xf32, #tpu.memory_space<vmem>>, vector<2x32xf32>,
    } else {
    }
    return
  }
  func.func @transform_0(%arg0: i32, %arg1: i32) -> (i32, i32) {
    %c0_i32 = arith.constant 0 : i32
    %c0_i32_0 = arith.constant 0 : i32
    return %arg1, %c0_i32 : i32, i32
  }
  func.func @transform_1(%arg0: i32, %arg1: i32) -> (i32, i32) {
    %c0_i32 = arith.constant 0 : i32
    %c0_i32_0 = arith.constant 0 : i32
    return %c0_i32, %arg1 : i32, i32
  }
  func.func @transform_2(%arg0: i32, %arg1: i32) -> (i32, i32) {
    %c0_i32 = arith.constant 0 : i32
    %c0_i32_0 = arith.constant 0 : i32
    %c0_i32_1 = arith.constant 0 : i32
    return %c0_i32, %c0_i32_0 : i32, i32
  }
  func.func @transform_3(%arg0: i32, %arg1: i32) -> (i32, i32) {
    %c0_i32 = arith.constant 0 : i32
    %c0_i32_0 = arith.constant 0 : i32
    %c0_i32_1 = arith.constant 0 : i32
    return %c0_i32, %c0_i32_0 : i32, i32
  }
}

</mosaic_0001>

<bundles_post_ra>
// kernel: tpu_custom_call.1
= control target key start
LH: loop header
LB: loop body
LE: loop exit
PB: predicated region body
PF: predicated region fallthrough
CT: control target
= control target key end

     0   :  { %8 = vsyncpa [#allocation6], 0  ;;  %s1243_s12 = smov 0   ;;  %s1245_s13 = smov 0   ;;  %s1493_s0 = inlined_call_operand.vmem [shape: f32[128,32], index: 0, kind: input, shape index: {}]   ;;  %s1494_s1 = inlined_call_operand.vmem [shape: s32[1,128], index: 1, kind: input, shape index: {}]   ;;  %s1495_s2 = inlined_call_operand.vmem [shape: f32[32,32], index: 2, kind: input, shape index: {}]   ;;  %s1496_s3 = inlined_call_operand.hbm [shape: f32[2,32], index: 3, kind: output, shape index: {}]  }
   0x1   :  { %s1247_s14 = smov 0  }
   0x2 LB: > { %s748_s15 = sadd.s32 4294967295, %s1210_s14   ;;  %s26_s16 = sadd.s32 1, %s1206_s13  ;;  %s1210_s14 = sphi %s1247_s14, %s14_s14   ;;  %s1206_s13 = sphi %s1245_s13, %s1501_s13   ;;  %s1202_s12 = sphi %s1243_s12, %s1500_s12  }
   0x3   : > { %p28_p0 = scmp.ge.s32.totalorder %s26_s16, 2  ;;  %p752_p1 = scmp.ge.s32.totalorder %s1210_s14, 1 }
   0x4   : > { %p154_p2 = scmp.lt.s32.totalorder %s1210_s14, 3 }
   0x5   : > { %s1503_s16 = smov (%p28_p0, %s26_s16), 0 }
   0x6   : > { %p155_p3 = pnand %p752_p1, %p154_p2 }
   0x7   : > { %v1267_v0 = vld [vmem:[%s1493_s0] sm:$0xff] (!%p155_p3)  ;;  %v1272_v1 = vld [vmem:[%s1493_s0 + $0x8] sm:$0xff] (!%p155_p3)  ;;  %v1277_v2 = vld [vmem:[%s1493_s0 + $0x10] sm:$0xff] (!%p155_p3)  ;;  %v202_v3 = vlaneseq (!%p155_p3)  ;;  %v1212_v19 = vmov (!%p155_p3), 0.0   ;;  %p755_p4 = scmp.ne.s32.totalorder (!%p155_p3), %s1202_s12, 0 }
   0x8   : > { %158 = sbr.rel (%p155_p3) target bundleno = 1183 (0x49f), region = 32  ;;  %v1282_v4 = vld [vmem:[%s1493_s0 + $0x18] sm:$0xff] (!%p155_p3)  ;;  %v1287_v5 = vld [vmem:[%s1493_s0 + $0x20] sm:$0xff] (!%p155_p3)  ;;  %v1292_v6 = vld [vmem:[%s1493_s0 + $0x28] sm:$0xff] (!%p155_p3) }
   0x9   : > { %v1297_v7 = vld [vmem:[%s1493_s0 + $0x30] sm:$0xff] (!%p155_p3)  ;;  %v1302_v8 = vld [vmem:[%s1493_s0 + $0x38] sm:$0xff] (!%p155_p3)  ;;  %v1307_v9 = vld [vmem:[%s1493_s0 + $0x40] sm:$0xff] (!%p155_p3)  ;;  %v1309_v10 = vshrl.u32 (!%p155_p3), %v202_v3, 7 }
   0xa   : > { %v1314_v11 = vld [vmem:[%s1493_s0 + $0x48] sm:$0xff] (!%p155_p3)  ;;  %v1319_v12 = vld [vmem:[%s1493_s0 + $0x50] sm:$0xff] (!%p155_p3)  ;;  %v1324_v13 = vld [vmem:[%s1493_s0 + $0x58] sm:$0xff] (!%p155_p3) }
   0xb   : > { %v1329_v14 = vld [vmem:[%s1493_s0 + $0x60] sm:$0xff] (!%p155_p3)  ;;  %v1334_v15 = vld [vmem:[%s1493_s0 + $0x68] sm:$0xff] (!%p155_p3)  ;;  %v1339_v16 = vld [vmem:[%s1493_s0 + $0x70] sm:$0xff] (!%p155_p3) }
   0xc   : > { %v1344_v17 = vld [vmem:[%s1493_s0 + $0x78] sm:$0xff] (!%p155_p3)  ;;  %v753_v18 = vld [vmem:[%s1494_s1] ss:$0 sm:$0xff] (!%p155_p3) }
   0xd   : > { %vm208_vm0 = vcmp.eq.s32.totalorder (!%p155_p3), %v1309_v10, %v753_v18 }
   0xe   : > { %v1352_v20 = vsel (!%p155_p3), %vm208_vm0, 1.0, %v1212_v19 }
   0xf   : > { %214 = sbr.rel (%p755_p4) target bundleno = 637 (0x27d), region = 36  ;;  %v1213_v21 = vmov (!%p755_p4), 0.0|0.0   ;;  %vm1214_vm1 = vmmov (!%p755_p4), 0   ;;  %v1215_v22 = vmov (!%p755_p4), 0.0   ;;  %v1007_v23 = vpack.c.bf16 (!%p755_p4), %v1272_v1, %v1267_v0  ;;  %v384_v44 = vld [vmem:[%s1495_s2] sm:$0xff] (!%p755_p4)  ;;  %v385_v45 = vld [vmem:[%s1495_s2 + $0x8] sm:$0xff] (!%p755_p4) }
  0x10   : > { %1030 = vmatprep.subr.bf16.mxu1 (!%p755_p4), %v1213_v21  ;;  %922 = vmatprep.mubr.msk.f32.mxu1 (!%p755_p4), %vm1214_vm1, %v1215_v22  ;;  %v1216_v24 = vmov (!%p755_p4), 1.0|1.0   ;;  %vm221_vm2 = vcmask (!%p755_p4), 1024   ;;  %v1010_v25 = vpack.c.bf16 (!%p755_p4), %v1282_v4, %v1277_v2  ;;  %v1013_v26 = vpack.c.bf16 (!%p755_p4), %v1292_v6, %v1287_v5  ;;  %v386_v47 = vld [vmem:[%s1495_s2 + $0x10] sm:$0xff] (!%p755_p4)  ;;  %v387_v48 = vld [vmem:[%s1495_s2 + $0x18] sm:$0xff] (!%p755_p4) }
  0x11   : > { %1031 = vmatpush3.bf16.msra.mxu1 (!%p755_p4), %v1216_v24  ;;  %1006 = vmatprep.subr.bf16.mxu0 (!%p755_p4), %v1213_v21  ;;  %222 = vst.msk [vmem:[#allocation3] sm:$0x3] (!%p755_p4), %vm221_vm2, %v1215_v22  ;;  %v1016_v27 = vpack.c.bf16 (!%p755_p4), %v1302_v8, %v1297_v7  ;;  %v1019_v28 = vpack.c.bf16 (!%p755_p4), %v1314_v11, %v1307_v9  ;;  %v1217_v32 = vmov (!%p755_p4), 1.0   ;;  %v1218_v33 = vmov (!%p755_p4), 0  }
  0x12   : > { %1032 = vmatprep.subr.bf16.mxu1 (!%p755_p4), %v1213_v21  ;;  %1008 = vmatpush3.bf16.msra.mxu0 (!%p755_p4), %v1007_v23  ;;  %v1022_v29 = vpack.c.bf16 (!%p755_p4), %v1324_v13, %v1319_v12  ;;  %v1025_v30 = vpack.c.bf16 (!%p755_p4), %v1334_v15, %v1329_v14  ;;  %v1028_v31 = vpack.c.bf16 (!%p755_p4), %v1344_v17, %v1339_v16  ;;  %vm219_vm3 = vcmask (!%p755_p4), 254976  }
  0x13   : > { %1009 = vmatprep.subr.bf16.mxu0 (!%p755_p4), %v1213_v21  ;;  %887 = vmatprep.mubr.msk.f32.mxu0 (!%p755_p4), %vm1214_vm1, %v1215_v22  ;;  %220 = vst.msk [vmem:[#allocation2] sm:$0x3] (!%p755_p4), %vm219_vm3, %v1215_v22  ;;  %v1047_v46 = vpack.c.bf16 (!%p755_p4), %v385_v45, %v384_v44  ;;  %v1050_v49 = vpack.c.bf16 (!%p755_p4), %v387_v48, %v386_v47  ;;  %vm388_vm4 = vcmask (!%p755_p4), 261120  }
  0x14   : > { %1149 = vset.pattern.permute.xlu0 (!%p755_p4), %v1218_v33 }
  0x15   : > { %1033 = vmatpush3.bf16.msra.mxu1 (!%p755_p4), %v1216_v24 }
  0x16   : > { %1034 = vmatprep.subr.bf16.mxu1 %v1213_v21  ;;  %1011 = vmatpush3.bf16.msra.mxu0 %v1010_v25 }
  0x17   : > { %1012 = vmatprep.subr.bf16.mxu0 %v1213_v21 }
  0x18   : > { %v297_v34 = vld [vmem:[#allocation3] sm:$0x3] }
  0x19   : > { %1035 = vmatpush3.bf16.msra.mxu1 %v1216_v24 }
  0x1a   : > { %1036 = vmatprep.subr.bf16.mxu1 %v1213_v21  ;;  %1014 = vmatpush3.bf16.msra.mxu0 %v1013_v26  ;;  %v223_v35 = vld [vmem:[#allocation2] sm:$0x3] }
  0x1b   : > { %1015 = vmatprep.subr.bf16.mxu0 %v1213_v21 }
  0x1d   : > { %1037 = vmatpush3.bf16.msra.mxu1 %v1216_v24 }
  0x1e   : > { %1038 = vmatprep.subr.bf16.mxu1 %v1213_v21  ;;  %1017 = vmatpush3.bf16.msra.mxu0 %v1016_v27 }
  0x1f   : > { %1018 = vmatprep.subr.bf16.mxu0 %v1213_v21 }
  0x21   : > { %1039 = vmatpush3.bf16.msra.mxu1 %v1216_v24 }
  0x22   : > { %1040 = vmatprep.subr.bf16.mxu1 %v1213_v21  ;;  %1020 = vmatpush3.bf16.msra.mxu0 %v1019_v28 }
  0x23   : > { %1021 = vmatprep.subr.bf16.mxu0 %v1213_v21 }
  0x25   : > { %1041 = vmatpush3.bf16.msra.mxu1 %v1216_v24 }
  0x26   : > { %1042 = vmatprep.subr.bf16.mxu1 %v1213_v21  ;;  %1023 = vmatpush3.bf16.msra.mxu0 %v1022_v29 }
  0x27   : > { %1024 = vmatprep.subr.bf16.mxu0 %v1213_v21 }
  0x29   : > { %1043 = vmatpush3.bf16.msra.mxu1 %v1216_v24 }
  0x2a   : > { %1044 = vmatprep.subr.bf16.mxu1 %v1213_v21  ;;  %1026 = vmatpush3.bf16.msra.mxu0 %v1025_v30 }
  0x2b   : > { %1027 = vmatprep.subr.bf16.mxu0 %v1213_v21 }
  0x2d   : > { %1045 = vmatpush3.bf16.msra.mxu1 %v1216_v24 }
  0x2e   : > { %1029 = vmatpush3.bf16.msra.mxu0 %v1028_v31 }
  0x2f   : > { %1046 = vmatprep.subr.bf16.mxu0 %v1213_v21 }
  0x30   : > { %923 = vmatmul.mubr.msk.f32.vlgmr.msra.gmra.mrb[0].mxu1 %vm208_vm0, %v1217_v32 }
  0x31   : > { %888 = vmatmul.mubr.msk.f32.vlgmr.msra.gmra.mrb[0].mxu0 %vm208_vm0, %v1217_v32 }
  0x32   : > { %933 = vmatprep.mubr.msk.f32.mxu0 %vm1214_vm1, %v1215_v22  ;;  %1048 = vmatpush3.bf16.msra.mxu0 %v1047_v46 }
  0x33   : > { %1049 = vmatprep.subr.bf16.mxu0 %v1213_v21 }
  0x36   : > { %1051 = vmatpush3.bf16.msra.mxu0 %v1050_v49 }
 0x103   : > { %v364_v36 = vpop.f32.mrb[0].mxu1 }
 0x104   : > { %v368_v37 = vadd.f32 %v364_v36, %v297_v34  ;;  %v924_v38 = vpop.f32.mrb[1].mxu1  ;;  %v290_v39 = vpop.f32.mrb[0].mxu0 }
 0x105   : > { %v294_v40 = vadd.f32 %v290_v39, %v223_v35  ;;  %v889_v41 = vpop.f32.mrb[1].mxu0 }
 0x106   : > { %370 = vst.msk [vmem:[#allocation3] sm:$0x3] %vm221_vm2, %v368_v37 }
 0x107   : > { %296 = vst.msk [vmem:[#allocation2] sm:$0x3] %vm219_vm3, %v294_v40 }
 0x10d   : > { %v374_v42 = vld [vmem:[#allocation3] sm:$0x3] }
 0x10e   : > { %v375_v43 = vmax.f32 %v374_v42, 1.0  ;;  %v376_v51 = vld [vmem:[#allocation2] sm:$0x3] }
 0x110   : > { %379 = vperm.xlu0 %1149, %v375_v43  }
 0x18f   : > { %v380_v50 = vpop.permute.xlu0 %379 }
 0x190   : > { %1150 = vrcp.f32 %v380_v50 }
 0x19a   : > { %v1151_v52 = vpop.eup %1150 }
 0x19b   : > { %v383_v53 = vmul.f32 %v1151_v52, %v376_v51 }
 0x19d   : > { %934 = vmatmul.mubr.msk.f32.vlgmr.msra.gmra.mrb[2].mxu0 %vm388_vm4, %v383_v53 }
 0x270   : > { %v458_v54 = vpop.f32.mrb[2].mxu0 }
 0x271   : > { %1152 = vtanh.f32 %v458_v54  ;;  %v935_v55 = vpop.f32.mrb[3].mxu0 }
 0x27b   : > { %v1153_v56 = vpop.eup %1152 }
 0x27c   : > { %463 = vst.msk [vmem:[#allocation4] sm:$0x3] %vm219_vm3, %v1153_v56 }
 0x27d PF: > { %p759_p5 = scmp.ne.s32.totalorder %s1202_s12, 1 }
 0x27e   : > { %vm475_vm5 = vcmask (!%p759_p5), 261120   ;;  %v1053_v57 = vpack.c.bf16 (!%p759_p5), %v1272_v1, %v1267_v0  ;;  %v1219_v58 = vmov (!%p759_p5), 0.0|0.0   ;;  %vm472_vm7 = vcmask (!%p759_p5), 254976  }
 0x27f   : > { %467 = sbr.rel (%p759_p5) target bundleno = 1158 (0x486), region = 48  ;;  %1052 = vmatprep.subr.bf16.mxu0 (!%p759_p5), %v1219_v58  ;;  %vm1418_vm6 = vmpackc.low (!%p759_p5), %vm475_vm5, %vm475_vm5  ;;  %1084 = vmatprep.subr.bf16.mxu1 (!%p759_p5), %v1219_v58  ;;  %v1220_v60 = vmov (!%p759_p5), 0.0   ;;  %vm1221_vm8 = vmmov (!%p759_p5), 0   ;;  %v1057_v61 = vpack.c.bf16 (!%p759_p5), %v1282_v4, %v1277_v2  ;;  %v1061_v62 = vpack.c.bf16 (!%p759_p5), %v1292_v6, %v1287_v5 }
 0x280   : > { %1055 = vmatpush3.bf16.xpose.msk.msra.mxu0 (!%p759_p5), %vm1418_vm6, %v1053_v57  ;;  %473 = vst.msk [vmem:[#allocation5] sm:$0x3] (!%p759_p5), %vm472_vm7, %v1220_v60  ;;  %1086 = vmatpush3.bf16.msra.mxu1 (!%p759_p5), %v1053_v57  ;;  %v1065_v63 = vpack.c.bf16 (!%p759_p5), %v1302_v8, %v1297_v7  ;;  %v1069_v0 = vpack.c.bf16 (!%p759_p5), %v1314_v11, %v1307_v9 }
 0x281   : > { %1056 = vmatprep.subr.bf16.mxu0 (!%p759_p5), %v1219_v58  ;;  %968 = vmatprep.mubr.msk.f32.mxu0 (!%p759_p5), %vm1221_vm8, %v1220_v60  ;;  %v1073_v1 = vpack.c.bf16 (!%p759_p5), %v1324_v13, %v1319_v12  ;;  %v1077_v2 = vpack.c.bf16 (!%p759_p5), %v1334_v15, %v1329_v14  ;;  %v1081_v3 = vpack.c.bf16 (!%p759_p5), %v1344_v17, %v1339_v16 }
 0x282   : > { %1087 = vmatprep.subr.bf16.mxu1 (!%p759_p5), %v1219_v58  ;;  %1003 = vmatprep.mubr.msk.f32.mxu1 (!%p759_p5), %vm1221_vm8, %v1220_v60 }
 0x283   : > { %v474_v4 = vld [vmem:[#allocation4] sm:$0x3] (!%p759_p5) }
 0x284   : > { %1089 = vmatpush3.bf16.msra.mxu1 (!%p759_p5), %v1057_v61 }
 0x285   : > { %1090 = vmatprep.subr.bf16.mxu1 (!%p759_p5), %v1219_v58 }
 0x287   : > { %v604_v12 = vld [vmem:[#allocation5] sm:$0x3] }
 0x288   : > { %1059 = vmatpush3.bf16.xpose.msk.msra.mxu0 %vm1418_vm6, %v1057_v61  ;;  %1092 = vmatpush3.bf16.msra.mxu1 %v1061_v62 }
 0x289   : > { %1060 = vmatprep.subr.bf16.mxu0 %v1219_v58  ;;  %1093 = vmatprep.subr.bf16.mxu1 %v1219_v58 }
 0x28c   : > { %1095 = vmatpush3.bf16.msra.mxu1 %v1065_v63 }
 0x28d   : > { %1096 = vmatprep.subr.bf16.mxu1 %v1219_v58 }
 0x290   : > { %1063 = vmatpush3.bf16.xpose.msk.msra.mxu0 %vm1418_vm6, %v1061_v62  ;;  %1098 = vmatpush3.bf16.msra.mxu1 %v1069_v0 }
 0x291   : > { %1064 = vmatprep.subr.bf16.mxu0 %v1219_v58  ;;  %1099 = vmatprep.subr.bf16.mxu1 %v1219_v58 }
 0x294   : > { %1101 = vmatpush3.bf16.msra.mxu1 %v1073_v1 }
 0x295   : > { %1102 = vmatprep.subr.bf16.mxu1 %v1219_v58 }
 0x298   : > { %1067 = vmatpush3.bf16.xpose.msk.msra.mxu0 %vm1418_vm6, %v1065_v63  ;;  %1104 = vmatpush3.bf16.msra.mxu1 %v1077_v2 }
 0x299   : > { %1068 = vmatprep.subr.bf16.mxu0 %v1219_v58  ;;  %1105 = vmatprep.subr.bf16.mxu1 %v1219_v58 }
 0x29c   : > { %1107 = vmatpush3.bf16.msra.mxu1 %v1081_v3 }
 0x2a0   : > { %1071 = vmatpush3.bf16.xpose.msk.msra.mxu0 %vm1418_vm6, %v1069_v0 }
 0x2a1   : > { %1072 = vmatprep.subr.bf16.mxu0 %v1219_v58 }
 0x2a8   : > { %1075 = vmatpush3.bf16.xpose.msk.msra.mxu0 %vm1418_vm6, %v1073_v1 }
 0x2a9   : > { %1076 = vmatprep.subr.bf16.mxu0 %v1219_v58 }
 0x2b0   : > { %1079 = vmatpush3.bf16.xpose.msk.msra.mxu0 %vm1418_vm6, %v1077_v2 }
 0x2b1   : > { %1080 = vmatprep.subr.bf16.mxu0 %v1219_v58 }
 0x2b8   : > { %1083 = vmatpush3.bf16.xpose.msk.msra.mxu0 %vm1418_vm6, %v1081_v3 }
 0x2bf   : > { %969 = vmatmul.mubr.msk.f32.vlgmr.msra.gmra.mrb[0].mxu0 %vm475_vm5, %v474_v4 }
 0x392   : > { %v593_v5 = vpop.f32.mrb[0].mxu0 }
 0x393   : > { %v777_v6 = vmul.f32 -1.442695, %v593_v5  ;;  %v970_v7 = vpop.f32.mrb[1].mxu0 }
 0x395   : > { %1154 = vpow2.f32 %v777_v6 }
 0x39f   : > { %v1155_v8 = vpop.eup %1154 }
 0x3a0   : > { %v600_v9 = vadd.f32 1.0, %v1155_v8 }
 0x3a2   : > { %1156 = vrcp.f32 %v600_v9 }
 0x3ac   : > { %v1157_v10 = vpop.eup %1156 }
 0x3ad   : > { %v603_v11 = vmul.f32 %v1157_v10, %v1352_v20 }
 0x3af   : > { %1004 = vmatmul.mubr.f32.vlgmr.msra.gmra.mrb[0].mxu1 %v603_v11 }
 0x482   : > { %v671_v13 = vpop.f32.mrb[0].mxu1 }
 0x483   : > { %v675_v14 = vadd.f32 %v671_v13, %v604_v12  ;;  %v1005_v15 = vpop.f32.mrb[1].mxu1 }
 0x485   : > { %677 = vst.msk [vmem:[#allocation5] sm:$0x3] %vm472_vm7, %v675_v14 }
 0x486 PF: > { %p1458_p6 = scmp.eq.s32.totalorder %s748_s15, 1  ;;  %s1222_s10 = smov [#allocation5]  }
 0x487   : > { %s685_s11 = sshll.u32 %s1222_s10, 4  ;;  %s686_s11 = int_to_ptr.vmem [resolvable:$true] %s685_s11 }
 0x488   : > { %s1158_s17 = scalar_lea.vmem %s686_s11, 32  ;;  %p1165_p10 = scmp.lt.s32.totalorder %s686_s11, %s686_s11 }
 0x489   : > { %p1159_p7 = scmp.ne.s32.totalorder %s686_s11, %s1158_s17  ;;  %p1166_p11 = scmp.lt.s32.totalorder %s1158_s17, %s1158_s17 }
 0x48b   : > { %p1160_p8 = pnand %p1159_p7, %p1458_p6  ;;  %p1167_p12 = por %p1166_p11, %p1165_p10 }
 0x48d   : > { %p1161_p9 = pneg %p1160_p8 }
 0x48f   : > { %p1168_p13 = pnand %p1167_p12, %p1161_p9 }
 0x491   : > { %1171 = shalt.err (!%p1168_p13)
}
 0x492   : > { %s1172_s15 = scalar_lea.hbm %s1496_s3, 32 }
 0x493   : > { %p1173_p0 = scmp.ne.s32.totalorder %s1496_s3, %s1172_s15  ;;  %p1178_p3 = scmp.lt.u32.totalorder %s1172_s15, %s1496_s3 }
 0x495   : > { %p1174_p1 = pnand %p1173_p0, %p1458_p6 }
 0x497   : > { %p1175_p2 = pneg %p1174_p1 }
 0x499   : > { %p1180_p4 = pnand %p1178_p3, %p1175_p2 }
 0x49b   : > { %1183 = shalt.err (!%p1180_p4)
}
 0x49c   : > { %1109 = dma.vmem_to_hbm [thread:$0]  (%p1458_p6), %s686_s11, 32, %s1496_s3, [#allocation6]  }
 0x49d   : > { %1197 = dma.done.wait (%p1458_p6), [#allocation6], 32  }
 0x49e   : > { %1199 = vsyncadd (%p1458_p6), [#allocation6], 4294967264 }
 0x49f PF: > { %s14_s14 = sadd.s32 1, %s1210_s14   ;;  %s1500_s12 = smov %s1206_s13 }
 0x4a0   : > { %p11_p5 = scmp.ge.s32.totalorder %s14_s14, 4   ;;  %s1501_s13 = smov %s1503_s16 }
 0x4a2   :  { %13 = sbr.rel (!%p11_p5) target bundleno = 2 (0x2), region = 82 }
 0x4a9   :  { %698 = vsyncpa [#allocation6], 1 }
 0x4aa   :  { %700 = vsyncpa [#allocation6 + $0x1], 1 }

</bundles_post_ra>
